<compile_context>
chip_gen: v5e
topology: v5e:2x2
jax: 0.10.0
libtpu: 0.0.40
codegen_flags: <defaults>
</compile_context>

<pallas_src>
import functools

import jax
import jax.numpy as jnp
from jax.experimental import pallas as pl
from jax.experimental.pallas import tpu as pltpu


def _round_up(x, m):
    return ((x + m - 1) // m) * m


def _cdiv(a, b):
    return -(-a // b)


@functools.lru_cache(maxsize=None)
def _tpu_config():
    """Returns (scoped_vmem_limit_bytes, tensorcores_per_chip)."""
    kind = ""
    try:
        kind = jax.devices()[0].device_kind.lower()
    except Exception:
        pass
    is_v7 = "v7" in kind
    n_cores = 2 if is_v7 else 1
    if is_v7:
        vmem_limit = 32 * 1024 * 1024      # 64 MiB VMEM per TensorCore on v7x
    elif ("v5" in kind) or ("v6" in kind):
        vmem_limit = 64 * 1024 * 1024      # 128 MiB VMEM on v5e/v5p/v6e
    else:
        vmem_limit = 32 * 1024 * 1024      # conservative default for other parts
    return vmem_limit, n_cores


def _choose_tiles(rows, hw, itemsize, block_budget_bytes, n_cores):
    """Pick (row_tile, hw_tile) for the (rows, hw) slab.

    Byte-based budget, lane-dense hw tiles, and no host-side padding: a block
    dim equal to the full array dim is exempt from the (8, 128) divisibility
    rule, and ragged trailing blocks are clipped/masked by Pallas.
    """
    elems = max(block_budget_bytes // itemsize, 8 * 128)
    max_lane = max(((elems // 8) // 128) * 128, 128)   # keep >= 8 sublanes/block

    if hw % 128 == 0:
        hw_tile = min(hw, max_lane)
    elif hw <= max_lane:
        hw_tile = hw          # full-dim lane block: exempt from 128 rule, no pad
    else:
        hw_tile = max_lane    # 128-multiple; ragged last lane block is masked

    rows_fit = max(elems // hw_tile, 8)
    if rows <= rows_fit:
        row_tile = rows       # full-dim block: exempt from the 8-sublane rule
    else:
        row_tile = max((rows_fit // 8) * 8, 8)

    # v7x (2 TensorCores/chip): keep the number of parallel grid blocks even so
    # both cores get balanced work. Skipped on 1-TC chips (pure overhead there).
    if n_cores >= 2:
        n_row, n_hw = _cdiv(rows, row_tile), _cdiv(hw, hw_tile)
        if (n_row * n_hw) % 2 == 1:
            if rows > 8:
                cand = _round_up(_cdiv(rows, n_row + 1), 8)
                if _cdiv(rows, cand) % 2 == 0:
                    row_tile = cand
            elif hw > 256:
                cand = _round_up(_cdiv(hw, n_hw + 1), 128)
                if _cdiv(hw, cand) % 2 == 0:
                    hw_tile = cand
    return row_tile, hw_tile


def _postact_kernel(x_ref, ss_ref, o_ref):
    # x_ref : (row_tile, hw_tile) tile of the (N*C, H*W) slab.
    # ss_ref: (row_tile, 2) packed per-row [scale, shift], f32.
    x = x_ref[...].astype(jnp.float32)
    scale = ss_ref[:, 0:1]
    shift = ss_ref[:, 1:2]
    o_ref[...] = jnp.maximum(x * scale + shift, 0.0).astype(o_ref.dtype)


@functools.partial(jax.jit, static_argnames=("eps", "donate_x"))
def post_activation(x, gamma, beta, running_mean, running_var, eps=1e-5,
                    donate_x=False):
    """BatchNorm2d (eval-mode: running stats + affine) followed by ReLU.

    x: (N, C, H, W) NCHW like PyTorch.
    gamma, beta, running_mean, running_var: (C,)
    donate_x: set True only when the caller donates x (serving paths); it
      aliases x's HBM buffer to the output instead of allocating a new one.
    """
    N, C, H, W = x.shape
    HW = H * W
    rows = N * C
    itemsize = x.dtype.itemsize

    # ---- Fold BN into per-channel scale/shift (cheap JAX glue, f32). ----
    inv_std = jax.lax.rsqrt(running_var.astype(jnp.float32) + eps)
    ch_scale = gamma.astype(jnp.float32) * inv_std                       # (C,)
    ch_shift = beta.astype(jnp.float32) - running_mean.astype(jnp.float32) * ch_scale

    # Per-row (n, c) [scale, shift]: row = n*C + c -> channel = row % C.
    ch_ss = jnp.stack([ch_scale, ch_shift], axis=-1)                     # (C, 2)
    row_ss = jnp.tile(ch_ss, (N, 1))                                     # (rows, 2)

    # ---- 2-D slab, lane-dense along H*W (no padding, no trailing slice). ----
    x2d = x.reshape(rows, HW)

    vmem_limit, n_cores = _tpu_config()
    # ~vmem_limit/8 bytes per x/out block -> double-buffered in+out stays well
    # inside the scoped budget on every generation.
    row_tile, hw_tile = _choose_tiles(rows, HW, itemsize, vmem_limit // 8, n_cores)
    grid = (pl.cdiv(rows, row_tile), pl.cdiv(HW, hw_tile))

    bytes_accessed = 2 * rows * HW * itemsize + rows * 2 * 4

    # NOTE: pipeline_mode=pl.Buffered(3) on the x spec can hide DMA issue
    # latency on v7x for very large grids, but should be profile-driven.
    out2d = pl.pallas_call(
        _postact_kernel,
        out_shape=jax.ShapeDtypeStruct((rows, HW), x.dtype),
        grid_spec=pltpu.PrefetchScalarGridSpec(
            num_scalar_prefetch=0,
            grid=grid,
            in_specs=[
                pl.BlockSpec((row_tile, hw_tile), lambda i, j: (i, j)),
                pl.BlockSpec((row_tile, 2), lambda i, j: (i, 0)),
            ],
            out_specs=pl.BlockSpec((row_tile, hw_tile), lambda i, j: (i, j)),
        ),
        compiler_params=pltpu.CompilerParams(
            dimension_semantics=("parallel", "parallel"),
            vmem_limit_bytes=vmem_limit,
        ),
        cost_estimate=pl.CostEstimate(
            flops=3 * rows * HW, transcendentals=0, bytes_accessed=bytes_accessed),
        input_output_aliases=({0: 0} if donate_x else {}),
    )(x2d, row_ss)

    return out2d.reshape(N, C, H, W)


def _reference(x, gamma, beta, mean, var, eps=1e-5):
    y = (x - mean[None, :, None, None]) * jax.lax.rsqrt(var[None, :, None, None] + eps)
    y = y * gamma[None, :, None, None] + beta[None, :, None, None]
    return jnp.maximum(y, 0.0)


if __name__ == "__main__":
    key = jax.random.PRNGKey(0)
    k_x, k_g, k_b, k_m, k_v = jax.random.split(key, 5)

    # ---- Check 1: basic shape, H*W a multiple of 128. ----
    N, C, H, W = 2, 4, 16, 16
    x = jax.random.normal(k_x, (N, C, H, W), dtype=jnp.float32)
    gamma = 1.0 + 0.1 * jax.random.normal(k_g, (C,), dtype=jnp.float32)
    beta = 0.1 * jax.random.normal(k_b, (C,), dtype=jnp.float32)
    running_mean = 0.1 * jax.random.normal(k_m, (C,), dtype=jnp.float32)
    running_var = jnp.abs(1.0 + 0.1 * jax.random.normal(k_v, (C,), dtype=jnp.float32))

    out = jax.block_until_ready(post_activation(x, gamma, beta, running_mean, running_var))
    ref = _reference(x, gamma, beta, running_mean, running_var)
    assert out.shape == (N, C, H, W)
    assert out.dtype == x.dtype
    assert jnp.allclose(out, ref, atol=1e-5, rtol=1e-5)

    # ---- Check 2: H*W NOT a multiple of 128 (14*14=196) and ragged row
    #      counts — exercises the full-dim lane block path (no host pad). ----
    N2, C2, H2, W2 = 3, 24, 14, 14
    x2 = jax.random.normal(k_x, (N2, C2, H2, W2), dtype=jnp.float32)
    g2 = 1.0 + 0.1 * jax.random.normal(k_g, (C2,), dtype=jnp.float32)
    b2 = 0.1 * jax.random.normal(k_b, (C2,), dtype=jnp.float32)
    m2 = 0.1 * jax.random.normal(k_m, (C2,), dtype=jnp.float32)
    v2 = jnp.abs(1.0 + 0.1 * jax.random.normal(k_v, (C2,), dtype=jnp.float32))

    out2 = jax.block_until_ready(post_activation(x2, g2, b2, m2, v2))
    ref2 = _reference(x2, g2, b2, m2, v2)
    assert out2.shape == (N2, C2, H2, W2)
    assert jnp.allclose(out2, ref2, atol=1e-5, rtol=1e-5)

    print("KERNEL_OK")
</pallas_src>

<mosaic_0001>
module attributes {stable_mosaic.version = 11 : i64} {
  func.func @_postact_kernel(%arg0: i32, %arg1: i32, %arg2: memref<8x256xf32, #tpu.memory_space<vmem>>, %arg3: memref<8x2xf32, #tpu.memory_space<vmem>>, %arg4: memref<8x256xf32, #tpu.memory_space<vmem>>) attributes {dimension_semantics = [#tpu.dimension_semantics<parallel>, #tpu.dimension_semantics<parallel>], iteration_bounds = array<i64: 1, 1>, scalar_prefetch = 0 : i64, scratch_operands = 0 : i64, tpu.core_type = #tpu.core_type<tc>, window_params = [{transform_indices = @transform_0, window_bounds = array<i64: 8, 256>}, {transform_indices = @transform_1, window_bounds = array<i64: 8, 2>}, {transform_indices = @transform_2, window_bounds = array<i64: 8, 256>}]} {
    %c0 = arith.constant 0 : index
    %c0_0 = arith.constant 0 : index
    %0 = vector.load %arg2[%c0, %c0_0] : memref<8x256xf32, #tpu.memory_space<vmem>>, vector<8x256xf32>
    %c0_1 = arith.constant 0 : index
    %c0_2 = arith.constant 0 : index
    %1 = vector.load %arg3[%c0_1, %c0_2] : memref<8x2xf32, #tpu.memory_space<vmem>>, vector<8x1xf32>
    %c0_3 = arith.constant 0 : index
    %c1 = arith.constant 1 : index
    %2 = vector.load %arg3[%c0_3, %c1] : memref<8x2xf32, #tpu.memory_space<vmem>>, vector<8x1xf32>
    %3 = vector.broadcast %1 : vector<8x1xf32> to vector<8x256xf32>
    %4 = arith.mulf %0, %3 : vector<8x256xf32>
    %5 = vector.broadcast %2 : vector<8x1xf32> to vector<8x256xf32>
    %6 = arith.addf %4, %5 : vector<8x256xf32>
    %cst = arith.constant 0.000000e+00 : f32
    %7 = vector.broadcast %cst : f32 to vector<8x256xf32>
    %8 = arith.maximumf %6, %7 : vector<8x256xf32>
    %c0_4 = arith.constant 0 : index
    %c0_5 = arith.constant 0 : index
    %9 = vector.load %arg4[%c0_4, %c0_5] : memref<8x256xf32, #tpu.memory_space<vmem>>, vector<8x256xf32>
    tpu.vector_store %arg4[%c0_4, %c0_5], %8 {strides = array<i32>} : memref<8x256xf32, #tpu.memory_space<vmem>>, vector<8x256xf32>,
    return
  }
  func.func @transform_0(%arg0: i32, %arg1: i32) -> (i32, i32) {
    %c0_i32 = arith.constant 0 : i32
    return %arg0, %arg1 : i32, i32
  }
  func.func @transform_1(%arg0: i32, %arg1: i32) -> (i32, i32) {
    %c0_i32 = arith.constant 0 : i32
    %c0_i32_0 = arith.constant 0 : i32
    return %arg0, %c0_i32 : i32, i32
  }
  func.func @transform_2(%arg0: i32, %arg1: i32) -> (i32, i32) {
    %c0_i32 = arith.constant 0 : i32
    return %arg0, %arg1 : i32, i32
  }
}

</mosaic_0001>

<bundles_post_ra>
// kernel: post_activation.1
= control target key start
LH: loop header
LB: loop body
LE: loop exit
PB: predicated region body
PF: predicated region fallthrough
CT: control target
= control target key end

     0   :  { %v39_v0 = vmov 0   ;;  %v40_v2 = vmov 1   ;;  %s71_s1 = inlined_call_operand.vmem [shape: f32[8,2], index: 1, kind: input, shape index: {}]   ;;  %s72_s0 = inlined_call_operand.vmem [shape: f32[8,256], index: 0, kind: input, shape index: {}]   ;;  %s73_s2 = inlined_call_operand.vmem [shape: f32[8,256], index: 2, kind: output, shape index: {}]  }
   0x1   :  { %37 = vset.pattern.permute.xlu0 %v39_v0  ;;  %v13_v1 = vld [vmem:[%s71_s1] sm:$0xff]  ;;  %v12_v5 = vld [vmem:[%s72_s0 + $0x8] sm:$0xff] }
   0x2   :  { %16 = vperm.xlu0 %37, %v13_v1   ;;  %v11_v4 = vld [vmem:[%s72_s0] sm:$0xff] }
   0xa   :  { %38 = vset.pattern.permute.xlu0 %v40_v2 }
   0xb   :  { %22 = vperm.xlu0 %38, %v13_v1  }
  0x74   :  { %v17_v3 = vpop.permute.xlu0 %16 }
  0x75   :  { %v19_v6 = vmul.f32 %v17_v3, %v11_v4  ;;  %v20_v7 = vmul.f32 %v17_v3, %v12_v5 }
  0x7d   :  { %v23_v8 = vpop.permute.xlu0 %22 }
  0x7e   :  { %v25_v9 = vadd.f32 %v23_v8, %v19_v6  ;;  %v26_v10 = vadd.f32 %v23_v8, %v20_v7 }
  0x80   :  { %v27_v11 = vmax.f32 %v25_v9, 0.0  ;;  %v28_v12 = vmax.f32 %v26_v10, 0.0 }
  0x82   :  { %29 = vst [vmem:[%s73_s2] sm:$0xff] %v27_v11 }
  0x83   :  { %30 = vst [vmem:[%s73_s2 + $0x8] sm:$0xff] %v28_v12 }

</bundles_post_ra>
